<compile_context>
chip_gen: v7x
topology: tpu7x:2x2x1
jax: 0.10.0
libtpu: 0.0.40
codegen_flags: <defaults>
</compile_context>

<pallas_src>
import functools

import jax
import jax.numpy as jnp
from jax import lax
from jax.experimental import pallas as pl
from jax.experimental.pallas import tpu as pltpu


def _pool_identity(dtype):
    """Dtype-aware identity for max-pooling (the pad value)."""
    dtype = jnp.dtype(dtype)
    if jnp.issubdtype(dtype, jnp.floating):
        return float("-inf")
    if jnp.issubdtype(dtype, jnp.integer):
        return int(jnp.iinfo(dtype).min)
    raise TypeError(f"max_pool: unsupported dtype {dtype}")


def _maxpool_kernel(x_ref, o_ref, *, radius, valid_w):
    """(2r+1)x(2r+1) stride-1 window max over each (H, Wp) slice of the block."""
    bt, H, Wp = x_ref.shape
    dtype = x_ref.dtype
    neg = jnp.asarray(_pool_identity(dtype), dtype=dtype)  # 0-d identity

    # Hoisted index grids (JAX does not CSE broadcast_in_dim).
    rows = lax.broadcasted_iota(jnp.int32, (H, Wp), 0)
    cols = lax.broadcasted_iota(jnp.int32, (H, Wp), 1)

    # If at least `radius` columns of -inf padding separate the valid region
    # from the lane wrap-around point, the column masks are unnecessary.
    skip_col_mask = (Wp - valid_w) >= radius

    for b in range(bt):  # small static unroll (bt <= 8)
        x = x_ref[b]  # (H, Wp), aligned layout throughout

        # ---- rows (sublane axis) ----
        rmax = x  # d == 0 term
        for d in range(1, radius + 1):
            if d >= H:
                break
            up = pltpu.roll(x, shift=H - d, axis=0)      # up[i, :] = x[i + d, :]
            up = jnp.where(rows < H - d, up, neg)
            dn = pltpu.roll(x, shift=d, axis=0)          # dn[i, :] = x[i - d, :]
            dn = jnp.where(rows >= d, dn, neg)
            rmax = jnp.maximum(rmax, jnp.maximum(up, dn))

        # ---- columns (lane axis) ----
        out = rmax  # d == 0 term
        for d in range(1, radius + 1):
            if d >= Wp:
                break
            lf = pltpu.roll(rmax, shift=Wp - d, axis=1)  # lf[:, j] = rmax[:, j + d]
            rt = pltpu.roll(rmax, shift=d, axis=1)       # rt[:, j] = rmax[:, j - d]
            if not skip_col_mask:
                lf = jnp.where(cols < Wp - d, lf, neg)
                rt = jnp.where(cols >= d, rt, neg)
            out = jnp.maximum(out, jnp.maximum(lf, rt))

        o_ref[b] = out


def max_pool(x: jax.Array, nms_radius: int) -> jax.Array:
    """Equivalent of MaxPool(nms_radius)(x) for x of shape (N, H, W)."""
    if nms_radius < 1:
        return x  # kernel_size == 1 -> identity
    N, H, W = x.shape
    identity = _pool_identity(x.dtype)

    # Lane-dense width: pad W up to a multiple of 128 with the pooling
    # identity so the kernel does unmasked, aligned vector loads/stores.
    Wp = ((W + 127) // 128) * 128
    if Wp != W:
        x = jnp.pad(x, ((0, 0), (0, 0), (0, Wp - W)), constant_values=identity)

    # Block a few batch elements per grid step (~2 MB per block target) so the
    # auto double-buffering pipeline has real work per step.
    frame_bytes = H * Wp * jnp.dtype(x.dtype).itemsize
    target_bytes = 2 * 1024 * 1024
    bt = max(1, min(N, 8, target_bytes // max(frame_bytes, 1)))
    grid = (pl.cdiv(N, bt),)
    # TODO(synk): for very large single frames (e.g. full-res images on v7x's
    # 64 MiB VMEM) add an H-tiled variant with a 2r-row halo.

    kernel = functools.partial(_maxpool_kernel, radius=nms_radius, valid_w=W)
    out = pl.pallas_call(
        kernel,
        out_shape=jax.ShapeDtypeStruct((N, H, Wp), x.dtype),
        grid=grid,
        in_specs=[pl.BlockSpec((bt, H, Wp), lambda i: (i, 0, 0))],
        out_specs=pl.BlockSpec((bt, H, Wp), lambda i: (i, 0, 0)),
        compiler_params=pltpu.CompilerParams(
            dimension_semantics=("parallel",)),
    )(x)
    return out[:, :, :W] if Wp != W else out


def _max_pool_ref(x: jax.Array, nms_radius: int) -> jax.Array:
    """Pure-JAX reference: max over (2r+1)x(2r+1) window, stride 1, -inf pad."""
    k = 2 * nms_radius + 1
    return lax.reduce_window(
        x, -jnp.inf, lax.max,
        window_dimensions=(1, k, k),
        window_strides=(1, 1, 1),
        padding=((0, 0), (nms_radius, nms_radius), (nms_radius, nms_radius)),
    )


if __name__ == "__main__":
    # SuperPoint default: MaxPool(nms_radius=4) -> kernel_size=9, stride=1, pad=4
    nms_radius = 4
    N, H, W = 2, 16, 16

    key = jax.random.PRNGKey(0)
    x = jax.random.normal(key, (N, H, W), dtype=jnp.float32)

    out = jax.block_until_ready(max_pool(x, nms_radius))

    ref = _max_pool_ref(x, nms_radius)
    if not jnp.allclose(out, ref):
        raise AssertionError("Pallas max-pool mismatch vs reference")

    print("KERNEL_OK")
</pallas_src>

<mosaic_0001>
module attributes {stable_mosaic.version = 11 : i64} {
  func.func @_maxpool_kernel(%arg0: i32, %arg1: memref<2x16x128xf32, #tpu.memory_space<vmem>>, %arg2: memref<2x16x128xf32, #tpu.memory_space<vmem>>) attributes {dimension_semantics = [#tpu.dimension_semantics<parallel>], iteration_bounds = array<i64: 1>, scalar_prefetch = 0 : i64, scratch_operands = 0 : i64, tpu.core_type = #tpu.core_type<tc>, window_params = [{transform_indices = @transform_0, window_bounds = array<i64: 2, 16, 128>}, {transform_indices = @transform_1, window_bounds = array<i64: 2, 16, 128>}]} {
    %0 = tpu.iota {dimensions = array<i32: 0>} : vector<16x128xi32>
    %c0 = arith.constant 0 : index
    %c0_0 = arith.constant 0 : index
    %c0_1 = arith.constant 0 : index
    %1 = vector.load %arg1[%c0, %c0_0, %c0_1] : memref<2x16x128xf32, #tpu.memory_space<vmem>>, vector<1x16x128xf32>
    %2 = vector.shape_cast %1 : vector<1x16x128xf32> to vector<16x128xf32>
    %c15_i32 = arith.constant 15 : i32
    %3 = tpu.dynamic_rotate %2 by %c15_i32 dim 0 : vector<16x128xf32>, i32 -> vector<16x128xf32>
    %c15_i32_2 = arith.constant 15 : i32
    %4 = vector.broadcast %c15_i32_2 : i32 to vector<16x128xi32>
    %5 = arith.cmpi slt, %0, %4 : vector<16x128xi32>
    %cst = arith.constant 0xFF800000 : f32
    %6 = vector.broadcast %cst : f32 to vector<16x128xf32>
    %7 = arith.select %5, %3, %6 : vector<16x128xi1>, vector<16x128xf32>
    %c1_i32 = arith.constant 1 : i32
    %8 = tpu.dynamic_rotate %2 by %c1_i32 dim 0 : vector<16x128xf32>, i32 -> vector<16x128xf32>
    %c1_i32_3 = arith.constant 1 : i32
    %9 = vector.broadcast %c1_i32_3 : i32 to vector<16x128xi32>
    %10 = arith.cmpi sge, %0, %9 : vector<16x128xi32>
    %cst_4 = arith.constant 0xFF800000 : f32
    %11 = vector.broadcast %cst_4 : f32 to vector<16x128xf32>
    %12 = arith.select %10, %8, %11 : vector<16x128xi1>, vector<16x128xf32>
    %13 = arith.maximumf %7, %12 : vector<16x128xf32>
    %14 = arith.maximumf %2, %13 : vector<16x128xf32>
    %c14_i32 = arith.constant 14 : i32
    %15 = tpu.dynamic_rotate %2 by %c14_i32 dim 0 : vector<16x128xf32>, i32 -> vector<16x128xf32>
    %c14_i32_5 = arith.constant 14 : i32
    %16 = vector.broadcast %c14_i32_5 : i32 to vector<16x128xi32>
    %17 = arith.cmpi slt, %0, %16 : vector<16x128xi32>
    %cst_6 = arith.constant 0xFF800000 : f32
    %18 = vector.broadcast %cst_6 : f32 to vector<16x128xf32>
    %19 = arith.select %17, %15, %18 : vector<16x128xi1>, vector<16x128xf32>
    %c2_i32 = arith.constant 2 : i32
    %20 = tpu.dynamic_rotate %2 by %c2_i32 dim 0 : vector<16x128xf32>, i32 -> vector<16x128xf32>
    %c2_i32_7 = arith.constant 2 : i32
    %21 = vector.broadcast %c2_i32_7 : i32 to vector<16x128xi32>
    %22 = arith.cmpi sge, %0, %21 : vector<16x128xi32>
    %cst_8 = arith.constant 0xFF800000 : f32
    %23 = vector.broadcast %cst_8 : f32 to vector<16x128xf32>
    %24 = arith.select %22, %20, %23 : vector<16x128xi1>, vector<16x128xf32>
    %25 = arith.maximumf %19, %24 : vector<16x128xf32>
    %26 = arith.maximumf %14, %25 : vector<16x128xf32>
    %c13_i32 = arith.constant 13 : i32
    %27 = tpu.dynamic_rotate %2 by %c13_i32 dim 0 : vector<16x128xf32>, i32 -> vector<16x128xf32>
    %c13_i32_9 = arith.constant 13 : i32
    %28 = vector.broadcast %c13_i32_9 : i32 to vector<16x128xi32>
    %29 = arith.cmpi slt, %0, %28 : vector<16x128xi32>
    %cst_10 = arith.constant 0xFF800000 : f32
    %30 = vector.broadcast %cst_10 : f32 to vector<16x128xf32>
    %31 = arith.select %29, %27, %30 : vector<16x128xi1>, vector<16x128xf32>
    %c3_i32 = arith.constant 3 : i32
    %32 = tpu.dynamic_rotate %2 by %c3_i32 dim 0 : vector<16x128xf32>, i32 -> vector<16x128xf32>
    %c3_i32_11 = arith.constant 3 : i32
    %33 = vector.broadcast %c3_i32_11 : i32 to vector<16x128xi32>
    %34 = arith.cmpi sge, %0, %33 : vector<16x128xi32>
    %cst_12 = arith.constant 0xFF800000 : f32
    %35 = vector.broadcast %cst_12 : f32 to vector<16x128xf32>
    %36 = arith.select %34, %32, %35 : vector<16x128xi1>, vector<16x128xf32>
    %37 = arith.maximumf %31, %36 : vector<16x128xf32>
    %38 = arith.maximumf %26, %37 : vector<16x128xf32>
    %c12_i32 = arith.constant 12 : i32
    %39 = tpu.dynamic_rotate %2 by %c12_i32 dim 0 : vector<16x128xf32>, i32 -> vector<16x128xf32>
    %c12_i32_13 = arith.constant 12 : i32
    %40 = vector.broadcast %c12_i32_13 : i32 to vector<16x128xi32>
    %41 = arith.cmpi slt, %0, %40 : vector<16x128xi32>
    %cst_14 = arith.constant 0xFF800000 : f32
    %42 = vector.broadcast %cst_14 : f32 to vector<16x128xf32>
    %43 = arith.select %41, %39, %42 : vector<16x128xi1>, vector<16x128xf32>
    %c4_i32 = arith.constant 4 : i32
    %44 = tpu.dynamic_rotate %2 by %c4_i32 dim 0 : vector<16x128xf32>, i32 -> vector<16x128xf32>
    %c4_i32_15 = arith.constant 4 : i32
    %45 = vector.broadcast %c4_i32_15 : i32 to vector<16x128xi32>
    %46 = arith.cmpi sge, %0, %45 : vector<16x128xi32>
    %cst_16 = arith.constant 0xFF800000 : f32
    %47 = vector.broadcast %cst_16 : f32 to vector<16x128xf32>
    %48 = arith.select %46, %44, %47 : vector<16x128xi1>, vector<16x128xf32>
    %49 = arith.maximumf %43, %48 : vector<16x128xf32>
    %50 = arith.maximumf %38, %49 : vector<16x128xf32>
    %c127_i32 = arith.constant 127 : i32
    %51 = tpu.dynamic_rotate %50 by %c127_i32 dim 1 : vector<16x128xf32>, i32 -> vector<16x128xf32>
    %c1_i32_17 = arith.constant 1 : i32
    %52 = tpu.dynamic_rotate %50 by %c1_i32_17 dim 1 : vector<16x128xf32>, i32 -> vector<16x128xf32>
    %53 = arith.maximumf %51, %52 : vector<16x128xf32>
    %54 = arith.maximumf %50, %53 : vector<16x128xf32>
    %c126_i32 = arith.constant 126 : i32
    %55 = tpu.dynamic_rotate %50 by %c126_i32 dim 1 : vector<16x128xf32>, i32 -> vector<16x128xf32>
    %c2_i32_18 = arith.constant 2 : i32
    %56 = tpu.dynamic_rotate %50 by %c2_i32_18 dim 1 : vector<16x128xf32>, i32 -> vector<16x128xf32>
    %57 = arith.maximumf %55, %56 : vector<16x128xf32>
    %58 = arith.maximumf %54, %57 : vector<16x128xf32>
    %c125_i32 = arith.constant 125 : i32
    %59 = tpu.dynamic_rotate %50 by %c125_i32 dim 1 : vector<16x128xf32>, i32 -> vector<16x128xf32>
    %c3_i32_19 = arith.constant 3 : i32
    %60 = tpu.dynamic_rotate %50 by %c3_i32_19 dim 1 : vector<16x128xf32>, i32 -> vector<16x128xf32>
    %61 = arith.maximumf %59, %60 : vector<16x128xf32>
    %62 = arith.maximumf %58, %61 : vector<16x128xf32>
    %c124_i32 = arith.constant 124 : i32
    %63 = tpu.dynamic_rotate %50 by %c124_i32 dim 1 : vector<16x128xf32>, i32 -> vector<16x128xf32>
    %c4_i32_20 = arith.constant 4 : i32
    %64 = tpu.dynamic_rotate %50 by %c4_i32_20 dim 1 : vector<16x128xf32>, i32 -> vector<16x128xf32>
    %65 = arith.maximumf %63, %64 : vector<16x128xf32>
    %66 = arith.maximumf %62, %65 : vector<16x128xf32>
    %c0_21 = arith.constant 0 : index
    %c0_22 = arith.constant 0 : index
    %c0_23 = arith.constant 0 : index
    %67 = vector.load %arg2[%c0_21, %c0_22, %c0_23] : memref<2x16x128xf32, #tpu.memory_space<vmem>>, vector<1x16x128xf32>
    %68 = vector.shape_cast %67 : vector<1x16x128xf32> to vector<16x128xf32>
    %69 = vector.shape_cast %66 : vector<16x128xf32> to vector<1x16x128xf32>
    tpu.vector_store %arg2[%c0_21, %c0_22, %c0_23], %69 {strides = array<i32>} : memref<2x16x128xf32, #tpu.memory_space<vmem>>, vector<1x16x128xf32>,
    %c1 = arith.constant 1 : index
    %c0_24 = arith.constant 0 : index
    %c0_25 = arith.constant 0 : index
    %70 = vector.load %arg1[%c1, %c0_24, %c0_25] : memref<2x16x128xf32, #tpu.memory_space<vmem>>, vector<1x16x128xf32>
    %71 = vector.shape_cast %70 : vector<1x16x128xf32> to vector<16x128xf32>
    %c15_i32_26 = arith.constant 15 : i32
    %72 = tpu.dynamic_rotate %71 by %c15_i32_26 dim 0 : vector<16x128xf32>, i32 -> vector<16x128xf32>
    %c15_i32_27 = arith.constant 15 : i32
    %73 = vector.broadcast %c15_i32_27 : i32 to vector<16x128xi32>
    %74 = arith.cmpi slt, %0, %73 : vector<16x128xi32>
    %cst_28 = arith.constant 0xFF800000 : f32
    %75 = vector.broadcast %cst_28 : f32 to vector<16x128xf32>
    %76 = arith.select %74, %72, %75 : vector<16x128xi1>, vector<16x128xf32>
    %c1_i32_29 = arith.constant 1 : i32
    %77 = tpu.dynamic_rotate %71 by %c1_i32_29 dim 0 : vector<16x128xf32>, i32 -> vector<16x128xf32>
    %c1_i32_30 = arith.constant 1 : i32
    %78 = vector.broadcast %c1_i32_30 : i32 to vector<16x128xi32>
    %79 = arith.cmpi sge, %0, %78 : vector<16x128xi32>
    %cst_31 = arith.constant 0xFF800000 : f32
    %80 = vector.broadcast %cst_31 : f32 to vector<16x128xf32>
    %81 = arith.select %79, %77, %80 : vector<16x128xi1>, vector<16x128xf32>
    %82 = arith.maximumf %76, %81 : vector<16x128xf32>
    %83 = arith.maximumf %71, %82 : vector<16x128xf32>
    %c14_i32_32 = arith.constant 14 : i32
    %84 = tpu.dynamic_rotate %71 by %c14_i32_32 dim 0 : vector<16x128xf32>, i32 -> vector<16x128xf32>
    %c14_i32_33 = arith.constant 14 : i32
    %85 = vector.broadcast %c14_i32_33 : i32 to vector<16x128xi32>
    %86 = arith.cmpi slt, %0, %85 : vector<16x128xi32>
    %cst_34 = arith.constant 0xFF800000 : f32
    %87 = vector.broadcast %cst_34 : f32 to vector<16x128xf32>
    %88 = arith.select %86, %84, %87 : vector<16x128xi1>, vector<16x128xf32>
    %c2_i32_35 = arith.constant 2 : i32
    %89 = tpu.dynamic_rotate %71 by %c2_i32_35 dim 0 : vector<16x128xf32>, i32 -> vector<16x128xf32>
    %c2_i32_36 = arith.constant 2 : i32
    %90 = vector.broadcast %c2_i32_36 : i32 to vector<16x128xi32>
    %91 = arith.cmpi sge, %0, %90 : vector<16x128xi32>
    %cst_37 = arith.constant 0xFF800000 : f32
    %92 = vector.broadcast %cst_37 : f32 to vector<16x128xf32>
    %93 = arith.select %91, %89, %92 : vector<16x128xi1>, vector<16x128xf32>
    %94 = arith.maximumf %88, %93 : vector<16x128xf32>
    %95 = arith.maximumf %83, %94 : vector<16x128xf32>
    %c13_i32_38 = arith.constant 13 : i32
    %96 = tpu.dynamic_rotate %71 by %c13_i32_38 dim 0 : vector<16x128xf32>, i32 -> vector<16x128xf32>
    %c13_i32_39 = arith.constant 13 : i32
    %97 = vector.broadcast %c13_i32_39 : i32 to vector<16x128xi32>
    %98 = arith.cmpi slt, %0, %97 : vector<16x128xi32>
    %cst_40 = arith.constant 0xFF800000 : f32
    %99 = vector.broadcast %cst_40 : f32 to vector<16x128xf32>
    %100 = arith.select %98, %96, %99 : vector<16x128xi1>, vector<16x128xf32>
    %c3_i32_41 = arith.constant 3 : i32
    %101 = tpu.dynamic_rotate %71 by %c3_i32_41 dim 0 : vector<16x128xf32>, i32 -> vector<16x128xf32>
    %c3_i32_42 = arith.constant 3 : i32
    %102 = vector.broadcast %c3_i32_42 : i32 to vector<16x128xi32>
    %103 = arith.cmpi sge, %0, %102 : vector<16x128xi32>
    %cst_43 = arith.constant 0xFF800000 : f32
    %104 = vector.broadcast %cst_43 : f32 to vector<16x128xf32>
    %105 = arith.select %103, %101, %104 : vector<16x128xi1>, vector<16x128xf32>
    %106 = arith.maximumf %100, %105 : vector<16x128xf32>
    %107 = arith.maximumf %95, %106 : vector<16x128xf32>
    %c12_i32_44 = arith.constant 12 : i32
    %108 = tpu.dynamic_rotate %71 by %c12_i32_44 dim 0 : vector<16x128xf32>, i32 -> vector<16x128xf32>
    %c12_i32_45 = arith.constant 12 : i32
    %109 = vector.broadcast %c12_i32_45 : i32 to vector<16x128xi32>
    %110 = arith.cmpi slt, %0, %109 : vector<16x128xi32>
    %cst_46 = arith.constant 0xFF800000 : f32
    %111 = vector.broadcast %cst_46 : f32 to vector<16x128xf32>
    %112 = arith.select %110, %108, %111 : vector<16x128xi1>, vector<16x128xf32>
    %c4_i32_47 = arith.constant 4 : i32
    %113 = tpu.dynamic_rotate %71 by %c4_i32_47 dim 0 : vector<16x128xf32>, i32 -> vector<16x128xf32>
    %c4_i32_48 = arith.constant 4 : i32
    %114 = vector.broadcast %c4_i32_48 : i32 to vector<16x128xi32>
    %115 = arith.cmpi sge, %0, %114 : vector<16x128xi32>
    %cst_49 = arith.constant 0xFF800000 : f32
    %116 = vector.broadcast %cst_49 : f32 to vector<16x128xf32>
    %117 = arith.select %115, %113, %116 : vector<16x128xi1>, vector<16x128xf32>
    %118 = arith.maximumf %112, %117 : vector<16x128xf32>
    %119 = arith.maximumf %107, %118 : vector<16x128xf32>
    %c127_i32_50 = arith.constant 127 : i32
    %120 = tpu.dynamic_rotate %119 by %c127_i32_50 dim 1 : vector<16x128xf32>, i32 -> vector<16x128xf32>
    %c1_i32_51 = arith.constant 1 : i32
    %121 = tpu.dynamic_rotate %119 by %c1_i32_51 dim 1 : vector<16x128xf32>, i32 -> vector<16x128xf32>
    %122 = arith.maximumf %120, %121 : vector<16x128xf32>
    %123 = arith.maximumf %119, %122 : vector<16x128xf32>
    %c126_i32_52 = arith.constant 126 : i32
    %124 = tpu.dynamic_rotate %119 by %c126_i32_52 dim 1 : vector<16x128xf32>, i32 -> vector<16x128xf32>
    %c2_i32_53 = arith.constant 2 : i32
    %125 = tpu.dynamic_rotate %119 by %c2_i32_53 dim 1 : vector<16x128xf32>, i32 -> vector<16x128xf32>
    %126 = arith.maximumf %124, %125 : vector<16x128xf32>
    %127 = arith.maximumf %123, %126 : vector<16x128xf32>
    %c125_i32_54 = arith.constant 125 : i32
    %128 = tpu.dynamic_rotate %119 by %c125_i32_54 dim 1 : vector<16x128xf32>, i32 -> vector<16x128xf32>
    %c3_i32_55 = arith.constant 3 : i32
    %129 = tpu.dynamic_rotate %119 by %c3_i32_55 dim 1 : vector<16x128xf32>, i32 -> vector<16x128xf32>
    %130 = arith.maximumf %128, %129 : vector<16x128xf32>
    %131 = arith.maximumf %127, %130 : vector<16x128xf32>
    %c124_i32_56 = arith.constant 124 : i32
    %132 = tpu.dynamic_rotate %119 by %c124_i32_56 dim 1 : vector<16x128xf32>, i32 -> vector<16x128xf32>
    %c4_i32_57 = arith.constant 4 : i32
    %133 = tpu.dynamic_rotate %119 by %c4_i32_57 dim 1 : vector<16x128xf32>, i32 -> vector<16x128xf32>
    %134 = arith.maximumf %132, %133 : vector<16x128xf32>
    %135 = arith.maximumf %131, %134 : vector<16x128xf32>
    %c1_58 = arith.constant 1 : index
    %c0_59 = arith.constant 0 : index
    %c0_60 = arith.constant 0 : index
    %136 = vector.load %arg2[%c1_58, %c0_59, %c0_60] : memref<2x16x128xf32, #tpu.memory_space<vmem>>, vector<1x16x128xf32>
    %137 = vector.shape_cast %136 : vector<1x16x128xf32> to vector<16x128xf32>
    %138 = vector.shape_cast %135 : vector<16x128xf32> to vector<1x16x128xf32>
    tpu.vector_store %arg2[%c1_58, %c0_59, %c0_60], %138 {strides = array<i32>} : memref<2x16x128xf32, #tpu.memory_space<vmem>>, vector<1x16x128xf32>,
    return
  }
  func.func @transform_0(%arg0: i32) -> (i32, i32, i32) {
    %c0_i32 = arith.constant 0 : i32
    %c0_i32_0 = arith.constant 0 : i32
    %c0_i32_1 = arith.constant 0 : i32
    return %arg0, %c0_i32, %c0_i32_0 : i32, i32, i32
  }
  func.func @transform_1(%arg0: i32) -> (i32, i32, i32) {
    %c0_i32 = arith.constant 0 : i32
    %c0_i32_0 = arith.constant 0 : i32
    %c0_i32_1 = arith.constant 0 : i32
    return %arg0, %c0_i32, %c0_i32_0 : i32, i32, i32
  }
}

</mosaic_0001>

<bundles_post_ra>
// kernel: tpu_custom_call.1
= control target key start
LH: loop header
LB: loop body
LE: loop exit
PB: predicated region body
PF: predicated region fallthrough
CT: control target
= control target key end

     0   :  { %6 = vsyncpa [#allocation3], 0  ;;  %s584_s0 = inlined_call_operand.hbm [shape: f32[2,16,128], index: 0, kind: input, shape index: {}]   ;;  %s585_s1 = inlined_call_operand.hbm [shape: f32[2,16,128], index: 1, kind: output, shape index: {}]  }
   0x1   :  { %7 = vsyncpa [#allocation4], 0  ;;  %s352_s6 = smov [#allocation2]   ;;  %s304_s10 = scalar_lea.hbm %s584_s0, 512 }
   0x2   :  { %s13_s7 = sshll.u32 %s352_s6, 4  ;;  %p305_p0 = scmp.ne.s32.totalorder %s584_s0, %s304_s10  ;;  %s14_s7 = int_to_ptr.vmem [resolvable:$true] %s13_s7 }
   0x3   :  { %p308_p1 = scmp.lt.u32.totalorder %s304_s10, %s584_s0 }
   0x5   :  { %p310_p2 = pnand %p308_p1, %p305_p0 }
   0x7   :  { %313 = shalt.err (!%p310_p2)
}
   0x8   :  { %s314_s15 = scalar_lea.vmem %s14_s7, 512  ;;  %p319_p4 = scmp.lt.s32.totalorder %s14_s7, %s14_s7 }
   0x9   :  { %p315_p3 = scmp.ne.s32.totalorder %s14_s7, %s314_s15  ;;  %p320_p5 = scmp.lt.s32.totalorder %s314_s15, %s314_s15 }
   0xb   :  { %p321_p6 = por %p320_p5, %p319_p4 }
   0xd   :  { %p322_p7 = pnand %p321_p6, %p315_p3 }
   0xf   :  { %325 = shalt.err (!%p322_p7)
}
  0x10   :  { %s353_s16 = smov 128   ;;  %s354_s17 = smov 8  }
  0x11   :  { %19 = dma.hbm_to_vmem [thread:$0]  %s584_s0, 512, %s14_s7, [#allocation3], %s353_s16, %s353_s16, %s354_s17  }
  0x12   :  { %348 = dma.done.wait [#allocation3], 512  }
  0x13   :  { %349 = vsyncadd [#allocation3], 4294966784  ;;  %v23_v0 = vlaneseq  ;;  %v26_v2 = vld [vmem:[#allocation2] sm:$0xff]  ;;  %v27_v3 = vld [vmem:[#allocation2 + $0x8] sm:$0xff]  ;;  %s355_s0 = smov 1   ;;  %s356_s20 = smov 127  }
  0x14   :  { %v28_v5 = vrot.slane %v26_v2, 1  ;;  %v29_v6 = vrot.slane %v27_v3, 1  ;;  %v37_v7 = vrot.slane %v26_v2, 7  ;;  %v38_v8 = vrot.slane %v27_v3, 7  ;;  %v441_v43 = vld [vmem:[#allocation2 + $0x10] sm:$0xff]  ;;  %v447_v48 = vld [vmem:[#allocation2 + $0x18] sm:$0xff] }
  0x15   :  { %v389_v1 = vshrl.u32 %v23_v0, 7  ;;  %v50_v9 = vrot.slane %v26_v2, 2  ;;  %v51_v10 = vrot.slane %v27_v3, 2  ;;  %v59_v11 = vrot.slane %v26_v2, 6  ;;  %s357_s21 = smov 126   ;;  %s358_s22 = smov 2  }
  0x16   :  { %v60_v12 = vrot.slane %v27_v3, 6  ;;  %v72_v15 = vrot.slane %v26_v2, 3  ;;  %v73_v16 = vrot.slane %v27_v3, 3  ;;  %v81_v20 = vrot.slane %v26_v2, 5  ;;  %s359_s23 = smov 125   ;;  %s360_s24 = smov 3  }
  0x17   :  { %vm30_vm0 = vcmp.lt.s32.totalorder %v389_v1, 7  ;;  %vm39_vm1 = vcmp.lt.s32.totalorder %v389_v1, 1  ;;  %vm42_vm2 = vcmp.ge.s32.totalorder %v389_v1, 1  ;;  %vm52_vm3 = vcmp.lt.s32.totalorder %v389_v1, 6  ;;  %s361_s25 = smov 124   ;;  %s362_s26 = smov 4  }
  0x18   :  { %vm61_vm4 = vcmp.lt.s32.totalorder %v389_v1, 2  ;;  %vm64_vm5 = vcmp.ge.s32.totalorder %v389_v1, 2  ;;  %vm74_vm6 = vcmp.lt.s32.totalorder %v389_v1, 5  ;;  %vm83_vm7 = vcmp.lt.s32.totalorder %v389_v1, 3  ;;  %s363_s27 = smov [#allocation5]  }
  0x19   :  { %vm86_vm8 = vcmp.ge.s32.totalorder %v389_v1, 3  ;;  %vm96_vm9 = vcmp.lt.s32.totalorder %v389_v1, 4  ;;  %vm103_vm10 = vcmp.ge.s32.totalorder %v389_v1, 4  ;;  %v403_v4 = vadd.s32 8, %v389_v1  ;;  %s280_s28 = sshll.u32 %s363_s27, 4  ;;  %s281_s28 = int_to_ptr.vmem [resolvable:$true] %s280_s28 }
  0x1a   :  { %v31_v13 = vsel %vm30_vm0, %v28_v5, %v29_v6  ;;  %v41_v14 = vsel %vm39_vm1, %v38_v8, %v37_v7  ;;  %v53_v18 = vsel %vm52_vm3, %v50_v9, %v51_v10  ;;  %v63_v19 = vsel %vm61_vm4, %v60_v12, %v59_v11  ;;  %s326_s29 = scalar_lea.vmem %s281_s28, 512  ;;  %p331_p9 = scmp.lt.s32.totalorder %s281_s28, %s281_s28 }
  0x1b   :  { %v44_v17 = vsel %vm42_vm2, %v41_v14, -inf  ;;  %v66_v22 = vsel %vm64_vm5, %v63_v19, -inf  ;;  %v75_v23 = vsel %vm74_vm6, %v72_v15, %v73_v16  ;;  %v82_v24 = vrot.slane %v27_v3, 5  ;;  %p327_p8 = scmp.ne.s32.totalorder %s281_s28, %s326_s29  ;;  %p332_p10 = scmp.lt.s32.totalorder %s326_s29, %s326_s29 }
  0x1c   :  { %v46_v21 = vmax.f32 %v31_v13, %v44_v17  ;;  %v68_v25 = vmax.f32 %v53_v18, %v66_v22  ;;  %v94_v26 = vrot.slane %v26_v2, 4  ;;  %v95_v27 = vrot.slane %v27_v3, 4 }
  0x1d   :  { %v32_v28 = vsel %vm30_vm0, %v29_v6, %v28_v5  ;;  %v85_v30 = vsel %vm83_vm7, %v82_v24, %v81_v20  ;;  %vm34_vm11 = vcmp.lt.s32.totalorder %v403_v4, 15  ;;  %v40_v31 = vsel %vm39_vm1, %v37_v7, %v38_v8  ;;  %p333_p11 = por %p332_p10, %p331_p9 }
  0x1e   :  { %v48_v29 = vmax.f32 %v26_v2, %v46_v21  ;;  %v88_v32 = vsel %vm86_vm8, %v85_v30, -inf  ;;  %v97_v33 = vsel %vm96_vm9, %v94_v26, %v95_v27  ;;  %v98_v34 = vsel %vm96_vm9, %v95_v27, %v94_v26 }
  0x1f   :  { %v36_v35 = vsel %vm34_vm11, %v32_v28, -inf  ;;  %v90_v37 = vmax.f32 %v75_v23, %v88_v32  ;;  %v105_v38 = vsel %vm103_vm10, %v98_v34, -inf  ;;  %v54_v41 = vsel %vm52_vm3, %v51_v10, %v50_v9  ;;  %p334_p12 = pnand %p333_p11, %p327_p8 }
  0x20   :  { %v70_v36 = vmax.f32 %v48_v29, %v68_v25  ;;  %v47_v39 = vmax.f32 %v36_v35, %v40_v31  ;;  %v107_v40 = vmax.f32 %v97_v33, %v105_v38  ;;  %vm56_vm12 = vcmp.lt.s32.totalorder %v403_v4, 14 }
  0x21   :  { %v62_v42 = vsel %vm61_vm4, %v59_v11, %v60_v12  ;;  %v58_v46 = vsel %vm56_vm12, %v54_v41, -inf  ;;  %v76_v47 = vsel %vm74_vm6, %v73_v16, %v72_v15  ;;  %vm78_vm13 = vcmp.lt.s32.totalorder %v403_v4, 13 }
  0x22   :  { %v92_v44 = vmax.f32 %v70_v36, %v90_v37  ;;  %v49_v45 = vmax.f32 %v27_v3, %v47_v39  ;;  %v69_v49 = vmax.f32 %v58_v46, %v62_v42  ;;  %v84_v50 = vsel %vm83_vm7, %v81_v20, %v82_v24 }
  0x23   :  { %vm100_vm14 = vcmp.lt.s32.totalorder %v403_v4, 12  ;;  %v80_v52 = vsel %vm78_vm13, %v76_v47, -inf  ;;  %v164_v54 = vrot.slane %v441_v43, 1  ;;  %v165_v58 = vrot.slane %v447_v48, 1 }
  0x24   :  { %v453_v51 = vmax.f32 %v92_v44, %v107_v40  ;;  %v102_v53 = vsel %vm100_vm14, %v98_v34, -inf  ;;  %v71_v55 = vmax.f32 %v49_v45, %v69_v49  ;;  %v91_v56 = vmax.f32 %v80_v52, %v84_v50 }
  0x25   :  { %v108_v57 = vmax.f32 %v102_v53, %v97_v33  ;;  %v170_v59 = vrot.slane %v441_v43, 7  ;;  %v171_v60 = vrot.slane %v447_v48, 7  ;;  %v180_v61 = vrot.slane %v441_v43, 2 }
  0x26   :  { %115 = vrot.lane.b32.xlu1 %v453_v51, %s355_s0  ;;  %111 = vrot.lane.b32.xlu0 %v453_v51, %s356_s20  ;;  %v181_v62 = vrot.slane %v447_v48, 2  ;;  %v93_v63 = vmax.f32 %v71_v55, %v91_v56  ;;  %v167_v0 = vsel %vm30_vm0, %v165_v58, %v164_v54  ;;  %v186_v2 = vrot.slane %v441_v43, 6 }
  0x27   :  { %v187_v3 = vrot.slane %v447_v48, 6  ;;  %v169_v5 = vsel %vm34_vm11, %v167_v0, -inf  ;;  %v172_v6 = vsel %vm39_vm1, %v170_v59, %v171_v60  ;;  %v196_v8 = vrot.slane %v441_v43, 3 }
  0x28   :  { %v183_v7 = vsel %vm52_vm3, %v181_v62, %v180_v61  ;;  %v480_v9 = vmax.f32 %v93_v63, %v108_v57  ;;  %v177_v10 = vmax.f32 %v169_v5, %v172_v6  ;;  %v197_v14 = vrot.slane %v447_v48, 3 }
  0x29   :  { %v185_v11 = vsel %vm56_vm12, %v183_v7, -inf  ;;  %v188_v12 = vsel %vm61_vm4, %v186_v2, %v187_v3  ;;  %v202_v15 = vrot.slane %v441_v43, 5  ;;  %v203_v16 = vrot.slane %v447_v48, 5 }
  0x2a   :  { %v193_v13 = vmax.f32 %v185_v11, %v188_v12  ;;  %117 = vrot.lane.b32.xlu1 %v480_v9, %s355_s0  ;;  %113 = vrot.lane.b32.xlu0 %v480_v9, %s356_s20  ;;  %v179_v17 = vmax.f32 %v447_v48, %v177_v10  ;;  %v212_v18 = vrot.slane %v441_v43, 4  ;;  %v213_v19 = vrot.slane %v447_v48, 4 }
  0x2b   :  { %v166_v20 = vsel %vm30_vm0, %v164_v54, %v165_v58  ;;  %v199_v21 = vsel %vm74_vm6, %v197_v14, %v196_v8  ;;  %v204_v22 = vsel %vm83_vm7, %v202_v15, %v203_v16  ;;  %v173_v23 = vsel %vm39_vm1, %v171_v60, %v170_v59 }
  0x2c   :  { %v182_v24 = vsel %vm52_vm3, %v180_v61, %v181_v62  ;;  %v195_v25 = vmax.f32 %v179_v17, %v193_v13  ;;  %v201_v26 = vsel %vm78_vm13, %v199_v21, -inf  ;;  %v214_v27 = vsel %vm96_vm9, %v212_v18, %v213_v19 }
  0x2d   :  { %v215_v28 = vsel %vm96_vm9, %v213_v19, %v212_v18  ;;  %v209_v29 = vmax.f32 %v201_v26, %v204_v22  ;;  %v174_v31 = vsel %vm42_vm2, %v173_v23, -inf  ;;  %v189_v32 = vsel %vm61_vm4, %v187_v3, %v186_v2 }
  0x2e   :  { %v217_v30 = vsel %vm100_vm14, %v215_v28, -inf  ;;  %v176_v34 = vmax.f32 %v166_v20, %v174_v31  ;;  %v190_v35 = vsel %vm64_vm5, %v189_v32, -inf  ;;  %v198_v36 = vsel %vm74_vm6, %v196_v8, %v197_v14 }
  0x2f   :  { %v221_v33 = vmax.f32 %v217_v30, %v214_v27  ;;  %v211_v37 = vmax.f32 %v195_v25, %v209_v29  ;;  %v192_v38 = vmax.f32 %v182_v24, %v190_v35  ;;  %v205_v4 = vsel %vm83_vm7, %v203_v16, %v202_v15 }
  0x30   :  { %v218_v39 = vsel %vm103_vm10, %v215_v28, -inf  ;;  %v178_v40 = vmax.f32 %v441_v43, %v176_v34  ;;  %v206_v41 = vsel %vm86_vm8, %v205_v4, -inf }
  0x31   :  { %v529_v42 = vmax.f32 %v211_v37, %v221_v33  ;;  %v208_v44 = vmax.f32 %v198_v36, %v206_v41  ;;  %v220_v46 = vmax.f32 %v214_v27, %v218_v39 }
  0x32   :  { %v194_v45 = vmax.f32 %v178_v40, %v192_v38 }
  0x33   :  { %226 = vrot.lane.b32.xlu1 %v529_v42, %s356_s20 }
  0x34   :  { %v210_v47 = vmax.f32 %v194_v45, %v208_v44 }
  0x36   :  { %v533_v48 = vmax.f32 %v210_v47, %v220_v46 }
  0x37   :  { %230 = vrot.lane.b32.xlu1 %v529_v42, %s355_s0 }
  0x38   :  { %224 = vrot.lane.b32.xlu0 %v533_v48, %s356_s20 }
  0x3b   :  { %125 = vrot.lane.b32.xlu1 %v480_v9, %s357_s21 }
  0x3c   :  { %228 = vrot.lane.b32.xlu0 %v533_v48, %s355_s0 }
  0x3f   :  { %129 = vrot.lane.b32.xlu1 %v480_v9, %s358_s22 }
  0x40   :  { %123 = vrot.lane.b32.xlu0 %v453_v51, %s357_s21 }
  0x43   :  { %238 = vrot.lane.b32.xlu1 %v529_v42, %s357_s21 }
  0x44   :  { %127 = vrot.lane.b32.xlu0 %v453_v51, %s358_s22 }
  0x47   :  { %242 = vrot.lane.b32.xlu1 %v529_v42, %s358_s22 }
  0x48   :  { %236 = vrot.lane.b32.xlu0 %v533_v48, %s357_s21 }
  0x4b   :  { %137 = vrot.lane.b32.xlu1 %v480_v9, %s359_s23 }
  0x4c   :  { %240 = vrot.lane.b32.xlu0 %v533_v48, %s358_s22 }
  0x4f   :  { %141 = vrot.lane.b32.xlu1 %v480_v9, %s360_s24 }
  0x50   :  { %135 = vrot.lane.b32.xlu0 %v453_v51, %s359_s23 }
  0x53   :  { %250 = vrot.lane.b32.xlu1 %v529_v42, %s359_s23 }
  0x54   :  { %139 = vrot.lane.b32.xlu0 %v453_v51, %s360_s24 }
  0x57   :  { %254 = vrot.lane.b32.xlu1 %v529_v42, %s360_s24 }
  0x58   :  { %248 = vrot.lane.b32.xlu0 %v533_v48, %s359_s23 }
  0x5b   :  { %149 = vrot.lane.b32.xlu1 %v480_v9, %s361_s25 }
  0x5c   :  { %252 = vrot.lane.b32.xlu0 %v533_v48, %s360_s24 }
  0x5f   :  { %153 = vrot.lane.b32.xlu1 %v480_v9, %s362_s26 }
  0x60   :  { %147 = vrot.lane.b32.xlu0 %v453_v51, %s361_s25 }
  0x63   :  { %262 = vrot.lane.b32.xlu1 %v529_v42, %s361_s25 }
  0x64   :  { %151 = vrot.lane.b32.xlu0 %v453_v51, %s362_s26 }
  0x67   :  { %266 = vrot.lane.b32.xlu1 %v529_v42, %s362_s26 }
  0x68   :  { %260 = vrot.lane.b32.xlu0 %v533_v48, %s361_s25 }
  0x6c   :  { %264 = vrot.lane.b32.xlu0 %v533_v48, %s362_s26 }
  0x98   :  { %v116_v1 = vpop.permute.xlu1 %115  ;;  %v112_v43 = vpop.permute.xlu0 %111 }
  0x99   :  { %v119_v16 = vmax.f32 %v112_v43, %v116_v1 }
  0x9b   :  { %v121_v24 = vmax.f32 %v453_v51, %v119_v16 }
  0x9c   :  { %v118_v49 = vpop.permute.xlu1 %117  ;;  %v114_v50 = vpop.permute.xlu0 %113 }
  0x9d   :  { %v120_v8 = vmax.f32 %v114_v50, %v118_v49 }
  0x9f   :  { %v122_v13 = vmax.f32 %v480_v9, %v120_v8 }
  0xa5   :  { %v227_v52 = vpop.permute.xlu1 %226 }
  0xa9   :  { %v231_v53 = vpop.permute.xlu1 %230 }
  0xaa   :  { %v225_v54 = vpop.permute.xlu0 %224  ;;  %v233_v20 = vmax.f32 %v227_v52, %v231_v53 }
  0xac   :  { %v235_v30 = vmax.f32 %v529_v42, %v233_v20 }
  0xad   :  { %v126_v55 = vpop.permute.xlu1 %125 }
  0xae   :  { %v229_v56 = vpop.permute.xlu0 %228 }
  0xaf   :  { %v232_v32 = vmax.f32 %v225_v54, %v229_v56 }
  0xb1   :  { %v130_v57 = vpop.permute.xlu1 %129  ;;  %v234_v40 = vmax.f32 %v533_v48, %v232_v32 }
  0xb2   :  { %v124_v58 = vpop.permute.xlu0 %123  ;;  %v132_v11 = vmax.f32 %v126_v55, %v130_v57 }
  0xb4   :  { %v134_v17 = vmax.f32 %v122_v13, %v132_v11 }
  0xb5   :  { %v239_v59 = vpop.permute.xlu1 %238 }
  0xb6   :  { %v128_v60 = vpop.permute.xlu0 %127 }
  0xb7   :  { %v131_v18 = vmax.f32 %v124_v58, %v128_v60 }
  0xb9   :  { %v243_v61 = vpop.permute.xlu1 %242  ;;  %v133_v28 = vmax.f32 %v121_v24, %v131_v18 }
  0xba   :  { %v237_v62 = vpop.permute.xlu0 %236  ;;  %v245_v26 = vmax.f32 %v239_v59, %v243_v61 }
  0xbc   :  { %v247_v35 = vmax.f32 %v235_v30, %v245_v26 }
  0xbd   :  { %v138_v63 = vpop.permute.xlu1 %137 }
  0xbe   :  { %v241_v0 = vpop.permute.xlu0 %240 }
  0xbf   :  { %v244_v36 = vmax.f32 %v237_v62, %v241_v0 }
  0xc1   :  { %v142_v2 = vpop.permute.xlu1 %141  ;;  %v246_v45 = vmax.f32 %v234_v40, %v244_v36 }
  0xc2   :  { %v136_v3 = vpop.permute.xlu0 %135  ;;  %v144_v14 = vmax.f32 %v138_v63, %v142_v2 }
  0xc4   :  { %v146_v21 = vmax.f32 %v134_v17, %v144_v14 }
  0xc5   :  { %v251_v5 = vpop.permute.xlu1 %250 }
  0xc6   :  { %v140_v6 = vpop.permute.xlu0 %139 }
  0xc7   :  { %v143_v25 = vmax.f32 %v136_v3, %v140_v6 }
  0xc9   :  { %v255_v7 = vpop.permute.xlu1 %254  ;;  %v145_v33 = vmax.f32 %v133_v28, %v143_v25 }
  0xca   :  { %v249_v10 = vpop.permute.xlu0 %248  ;;  %v257_v9 = vmax.f32 %v251_v5, %v255_v7 }
  0xcc   :  { %v259_v4 = vmax.f32 %v247_v35, %v257_v9 }
  0xcd   :  { %v150_v12 = vpop.permute.xlu1 %149 }
  0xce   :  { %v253_v15 = vpop.permute.xlu0 %252 }
  0xcf   :  { %v256_v41 = vmax.f32 %v249_v10, %v253_v15 }
  0xd1   :  { %v154_v19 = vpop.permute.xlu1 %153  ;;  %v258_v46 = vmax.f32 %v246_v45, %v256_v41 }
  0xd2   :  { %v148_v22 = vpop.permute.xlu0 %147  ;;  %v156_v23 = vmax.f32 %v150_v12, %v154_v19 }
  0xd4   :  { %v158_v27 = vmax.f32 %v146_v21, %v156_v23 }
  0xd5   :  { %v263_v29 = vpop.permute.xlu1 %262 }
  0xd6   :  { %160 = vst [vmem:[#allocation5 + $0x8] sm:$0xff] %v158_v27  ;;  %v152_v31 = vpop.permute.xlu0 %151 }
  0xd7   :  { %v155_v34 = vmax.f32 %v148_v22, %v152_v31 }
  0xd9   :  { %v157_v37 = vmax.f32 %v145_v33, %v155_v34  ;;  %v267_v38 = vpop.permute.xlu1 %266 }
  0xda   :  { %v261_v39 = vpop.permute.xlu0 %260  ;;  %v269_v51 = vmax.f32 %v263_v29, %v267_v38 }
  0xdb   :  { %159 = vst [vmem:[#allocation5] sm:$0xff] %v157_v37 }
  0xdc   :  { %v271_v44 = vmax.f32 %v259_v4, %v269_v51 }
  0xde   :  { %274 = vst [vmem:[#allocation5 + $0x18] sm:$0xff] %v271_v44  ;;  %v265_v42 = vpop.permute.xlu0 %264 }
  0xdf   :  { %v268_v47 = vmax.f32 %v261_v39, %v265_v42 }
  0xe1   :  { %v270_v1 = vmax.f32 %v258_v46, %v268_v47 }
  0xe3   :  { %273 = vst [vmem:[#allocation5 + $0x10] sm:$0xff] %v270_v1 }
  0xe4   :  { %337 = shalt.err (!%p334_p12)
}
  0xe5   :  { %s338_s3 = scalar_lea.hbm %s585_s1, 512 }
  0xe6   :  { %p339_p13 = scmp.ne.s32.totalorder %s585_s1, %s338_s3  ;;  %p342_p0 = scmp.lt.u32.totalorder %s338_s3, %s585_s1 }
  0xe8   :  { %p344_p1 = pnand %p342_p0, %p339_p13 }
  0xea   :  { %347 = shalt.err (!%p344_p1)
}
  0xeb   :  { %286 = dma.vmem_to_hbm [thread:$0]  %s281_s28, 512, %s585_s1, [#allocation4], %s353_s16, %s353_s16, %s354_s17  }
  0xec   :  { %350 = dma.done.wait [#allocation4], 512  }
  0xed   :  { %351 = vsyncadd [#allocation4], 4294966784 }
  0xee   :  { %290 = vsyncpa [#allocation3], 1 }
  0xef   :  { %291 = vsyncpa [#allocation4], 1 }

</bundles_post_ra>
